<compile_context>
chip_gen: v7x
topology: tpu7x:2x2x1
jax: 0.10.0
libtpu: 0.0.40
codegen_flags: <defaults>
</compile_context>

<pallas_src>
import functools

import numpy as np
import jax
import jax.numpy as jnp
from jax import lax
from jax.experimental import pallas as pl
from jax.experimental.pallas import tpu as pltpu


# ----------------------------- helpers -----------------------------

def _round_up(x, m):
    return ((x + m - 1) // m) * m


def _vmem_limit_bytes():
    """~75% of physical VMEM, capped at 96 MiB (=> ~48 MiB on v7x, 96 MiB on v5e/v6e)."""
    cap = 64 * 1024 * 1024  # conservative default if the query is unavailable
    try:
        cap = int(getattr(pltpu.get_tpu_info(), "vmem_capacity_bytes", cap))
    except Exception:
        pass
    return min((cap * 3) // 4, 96 * 1024 * 1024)


def _pick_seq_tile(S, *candidates):
    for t in candidates:
        if t <= S and S % t == 0:
            return t
    # TODO(synk): pad/mask the sequence dim for large S that divides no aligned tile.
    return S


# ----------------------------- fused QKV projection -----------------------------

def _qkv_proj_kernel(x_ref, w_ref, o_ref, acc_ref):
    """One (tm, tn) tile of  y = x @ w.T, accumulated over the K grid axis (may be 1 step).

    x_ref: (tm, tk) bf16; w_ref: (tn, tk) bf16 (nn.Linear layout); o_ref: (tm, tn) bf16.
    NT contraction feeds the MXU directly (no .T relayout); f32 accumulation.
    """
    @pl.when(pl.program_id(2) == 0)
    def _():
        acc_ref[...] = jnp.zeros_like(acc_ref)

    acc_ref[...] += lax.dot_general(
        x_ref[...], w_ref[...],
        dimension_numbers=(((1,), (1,)), ((), ())),
        preferred_element_type=jnp.float32)

    @pl.when(pl.program_id(2) == pl.num_programs(2) - 1)
    def _():
        o_ref[...] = acc_ref[...].astype(o_ref.dtype)


def pallas_qkv_proj(x2d, w_qkv, *, tm=512, tn=512, tk=512):
    """x2d: (M, K) bf16, w_qkv: (N, K) bf16 (N = 3*F).  Returns (M, N) bf16 = x @ w.T."""
    M, K = x2d.shape
    N, K2 = w_qkv.shape
    assert K == K2

    # Small weight: keep the whole (N, K) slab resident in VMEM -> grid over M only,
    # a single K step, no re-DMA of the weight across M tiles.
    if N * K * 2 <= 16 * 1024 * 1024:
        tn, tk = N, K

    tm = min(tm, _round_up(M, 16))    # 16-sublane alignment for bf16 M tiles
    tn = min(tn, _round_up(N, 128))   # lane alignment
    tk = min(tk, _round_up(K, 128))

    # Zero-pad non-dividing dims (zero weight rows / zero K columns are exact no-ops)
    # instead of silently falling back to one giant block.
    Mp, Np, Kp = _round_up(M, tm), _round_up(N, tn), _round_up(K, tk)
    if (Mp, Kp) != (M, K):
        x2d = jnp.pad(x2d, ((0, Mp - M), (0, Kp - K)))
    if (Np, Kp) != (N, K):
        w_qkv = jnp.pad(w_qkv, ((0, Np - N), (0, Kp - K)))

    grid = (Mp // tm, Np // tn, Kp // tk)
    out = pl.pallas_call(
        _qkv_proj_kernel,
        out_shape=jax.ShapeDtypeStruct((Mp, Np), jnp.bfloat16),
        grid_spec=pltpu.PrefetchScalarGridSpec(
            num_scalar_prefetch=0,
            grid=grid,
            in_specs=[
                pl.BlockSpec((tm, tk), lambda i, j, k: (i, k)),
                pl.BlockSpec((tn, tk), lambda i, j, k: (j, k)),
            ],
            out_specs=pl.BlockSpec((tm, tn), lambda i, j, k: (i, j)),
            scratch_shapes=[pltpu.VMEM((tm, tn), jnp.float32)],
        ),
        compiler_params=pltpu.CompilerParams(
            dimension_semantics=("parallel", "parallel", "arbitrary"),
            vmem_limit_bytes=_vmem_limit_bytes(),
        ),
        cost_estimate=pl.CostEstimate(
            flops=2 * Mp * Np * Kp,
            transcendentals=0,
            bytes_accessed=2 * (Mp * Kp + Np * Kp + Mp * Np),
        ),
    )(x2d, w_qkv)
    return out[:M, :N]


# ----------------------------- flash-style attention -----------------------------

def _flash_attn_kernel(q_ref, k_ref, v_ref, o_ref, m_scr, l_scr, acc_scr):
    """One (q_tile, kv_tile) flash step for a single (batch, head).

    q_ref: (tq, Dh) bf16 (1/sqrt(Dh) already folded into Wq); k_ref/v_ref: (tkv, Dh) bf16;
    o_ref: (tq, Dh) bf16.  Running max / denominator / accumulator live in f32 VMEM scratch
    so no (S, S) slab is ever materialized.
    """
    kv = pl.program_id(3)

    @pl.when(kv == 0)
    def _():
        m_scr[...] = jnp.full_like(m_scr, -jnp.inf)
        l_scr[...] = jnp.zeros_like(l_scr)
        acc_scr[...] = jnp.zeros_like(acc_scr)

    # scores: bf16 MXU operands, NT contraction (no k.T relayout), f32 accumulation.
    s = lax.dot_general(q_ref[...], k_ref[...],
                        dimension_numbers=(((1,), (1,)), ((), ())),
                        preferred_element_type=jnp.float32)            # (tq, tkv) f32

    m_prev = m_scr[...]
    m_new = jnp.maximum(m_prev, jnp.max(s, axis=-1, keepdims=True))
    alpha = jnp.exp(m_prev - m_new)                                     # EUP
    p = jnp.exp(s - m_new)
    l_scr[...] = alpha * l_scr[...] + jnp.sum(p, axis=-1, keepdims=True)
    acc_scr[...] = alpha * acc_scr[...] + jnp.dot(
        p.astype(v_ref.dtype), v_ref[...], preferred_element_type=jnp.float32)
    m_scr[...] = m_new

    @pl.when(kv == pl.num_programs(3) - 1)
    def _():
        o_ref[...] = (acc_scr[...] *
                      pl.reciprocal(l_scr[...], approx=True)).astype(o_ref.dtype)


def pallas_flash_attention(q, k, v, *, tq=256, tkv=512):
    """q, k, v: (B, H, S, Dh) bf16 (scale folded into q).  Returns (B, H, S, Dh) bf16."""
    B, H, S, Dh = q.shape
    tq = _pick_seq_tile(S, tq, 128)
    tkv = _pick_seq_tile(S, tkv, 256, 128)
    n_q, n_kv = S // tq, S // tkv

    q_spec = pl.BlockSpec((None, None, tq, Dh), lambda b, h, qi, ki: (b, h, qi, 0))
    kv_spec = pl.BlockSpec((None, None, tkv, Dh), lambda b, h, qi, ki: (b, h, ki, 0))
    o_spec = pl.BlockSpec((None, None, tq, Dh), lambda b, h, qi, ki: (b, h, qi, 0))

    return pl.pallas_call(
        _flash_attn_kernel,
        out_shape=jax.ShapeDtypeStruct((B, H, S, Dh), jnp.bfloat16),
        grid_spec=pltpu.PrefetchScalarGridSpec(
            num_scalar_prefetch=0,
            grid=(B, H, n_q, n_kv),
            in_specs=[q_spec, kv_spec, kv_spec],
            out_specs=o_spec,
            scratch_shapes=[pltpu.VMEM((tq, 1), jnp.float32),   # running max
                            pltpu.VMEM((tq, 1), jnp.float32),   # running denom
                            pltpu.VMEM((tq, Dh), jnp.float32)], # output accumulator
        ),
        compiler_params=pltpu.CompilerParams(
            dimension_semantics=("parallel", "parallel", "parallel", "arbitrary"),
            vmem_limit_bytes=_vmem_limit_bytes(),
        ),
        cost_estimate=pl.CostEstimate(
            flops=4 * B * H * S * S * Dh,            # QK^T + PV
            transcendentals=B * H * S * S,           # exp
            bytes_accessed=2 * B * H * S * Dh * (2 + 2 * n_q),
        ),
    )(q, k, v)


# ----------------------------- forward wrapper -----------------------------

def nearest_neighbor_attention_forward(x, coords, wq, wk, wv, num_heads):
    """Full-attention branch of NearestNeighborAttention.forward (bf16 autocast).

    x: (B, S, F) f32; coords unused when full_attention=True; wq/wk/wv: (F, F) f32,
    nn.Linear layout (out_features, in_features), bias=False.
    Returns (output (B, S, F) bf16, metric (B, S, F//num_heads) bf16).
    """
    del coords  # only used by the full_attention=False neighbor-gather branch
    B, S, F = x.shape
    H = num_heads
    Dh = F // H
    scale = float(Dh) ** (-0.5)

    # Fuse Q/K/V into one (3F, F) weight; fold the SDPA scale into Wq (free at runtime).
    w_qkv = jnp.concatenate([wq * scale, wk, wv], axis=0).astype(jnp.bfloat16)

    xb = x.astype(jnp.bfloat16).reshape(B * S, F)
    qkv = pallas_qkv_proj(xb, w_qkv).reshape(B, S, 3, H, Dh)   # contiguous reshape

    # metric = mean over heads of K: cheap XLA reduce on the slab (keeps the Pallas
    # kernel output lane-dense instead of emitting a Dh-wide masked store).
    metric = jnp.mean(qkv[:, :, 1].astype(jnp.float32), axis=2).astype(jnp.bfloat16)

    # Heads onto a leading axis -> flash kernel picks heads with BlockSpec leading dims
    # (no in-kernel lane sub-slicing or head concatenate).
    qkv_t = jnp.transpose(qkv, (2, 0, 3, 1, 4))                # (3, B, H, S, Dh)
    out_bhsd = pallas_flash_attention(qkv_t[0], qkv_t[1], qkv_t[2])

    out = jnp.transpose(out_bhsd, (0, 2, 1, 3)).reshape(B, S, F)
    return out, metric


# ----------------------------- pure-JAX reference (sanity check) -----------------------------

def _reference_forward(x, wq, wk, wv, num_heads):
    B, S, F = x.shape
    Dh = F // num_heads
    scale = float(Dh) ** (-0.5)
    xb = x.astype(jnp.bfloat16)

    def proj(w):
        y = jnp.dot(xb.reshape(B * S, F), w.astype(jnp.bfloat16).T,
                    preferred_element_type=jnp.float32).astype(jnp.bfloat16)
        return y.reshape(B, S, num_heads, Dh).transpose(0, 2, 1, 3)  # (B, H, S, Dh)

    q, k, v = proj(wq), proj(wk), proj(wv)
    s = jnp.einsum('bhqd,bhkd->bhqk', q.astype(jnp.float32), k.astype(jnp.float32)) * scale
    p = jax.nn.softmax(s, axis=-1)
    o = jnp.einsum('bhqk,bhkd->bhqd', p, v.astype(jnp.float32))
    out = o.transpose(0, 2, 1, 3).reshape(B, S, F).astype(jnp.bfloat16)
    metric = jnp.mean(k.astype(jnp.float32), axis=1).astype(jnp.bfloat16)
    return out, metric


# ----------------------------- demo -----------------------------

if __name__ == "__main__":
    B, S, F, H = 2, 16, 32, 4  # feature_dim=32, num_heads=4 -> head_dim=8

    key = jax.random.PRNGKey(0)
    kx, kc, k1, k2, k3 = jax.random.split(key, 5)

    x = jax.random.normal(kx, (B, S, F), dtype=jnp.float32)
    coords = jax.random.normal(kc, (B, S, 3), dtype=jnp.float32)

    # Deterministic "nn.Linear" weights (out_features, in_features), bias=False.
    winit = 1.0 / jnp.sqrt(jnp.float32(F))
    wq = jax.random.uniform(k1, (F, F), minval=-winit, maxval=winit, dtype=jnp.float32)
    wk = jax.random.uniform(k2, (F, F), minval=-winit, maxval=winit, dtype=jnp.float32)
    wv = jax.random.uniform(k3, (F, F), minval=-winit, maxval=winit, dtype=jnp.float32)

    fwd = jax.jit(functools.partial(nearest_neighbor_attention_forward, num_heads=H))
    output, metric = fwd(x, coords, wq, wk, wv)
    jax.block_until_ready((output, metric))

    assert output.shape == (B, S, F) and output.dtype == jnp.bfloat16
    assert metric.shape == (B, S, F // H) and metric.dtype == jnp.bfloat16

    # Correctness check against a pure-JAX reference of the module semantics.
    out_ref, met_ref = _reference_forward(x, wq, wk, wv, H)
    np.testing.assert_allclose(np.asarray(output.astype(jnp.float32)),
                               np.asarray(out_ref.astype(jnp.float32)),
                               atol=5e-2, rtol=5e-2)
    np.testing.assert_allclose(np.asarray(metric.astype(jnp.float32)),
                               np.asarray(met_ref.astype(jnp.float32)),
                               atol=5e-2, rtol=5e-2)

    print("KERNEL_OK")
</pallas_src>

<mosaic_0001>
module attributes {stable_mosaic.version = 11 : i64} {
  func.func @_qkv_proj_kernel(%arg0: i32, %arg1: i32, %arg2: i32, %arg3: memref<32x32xbf16, #tpu.memory_space<vmem>>, %arg4: memref<96x32xbf16, #tpu.memory_space<vmem>>, %arg5: memref<32x96xbf16, #tpu.memory_space<vmem>>, %arg6: memref<32x96xf32, #tpu.memory_space<vmem>>) attributes {dimension_semantics = [#tpu.dimension_semantics<parallel>, #tpu.dimension_semantics<parallel>, #tpu.dimension_semantics<arbitrary>], iteration_bounds = array<i64: 1, 1, 1>, scalar_prefetch = 0 : i64, scratch_operands = 1 : i64, tpu.core_type = #tpu.core_type<tc>, window_params = [{transform_indices = @transform_0, window_bounds = array<i64: 32, 32>}, {transform_indices = @transform_1, window_bounds = array<i64: 96, 32>}, {transform_indices = @transform_2, window_bounds = array<i64: 32, 96>}]} {
    %c0_i32 = arith.constant 0 : i32
    %0 = arith.cmpi eq, %arg2, %c0_i32 : i32
    %1 = arith.extui %0 : i1 to i32
    %c0_i32_0 = arith.constant 0 : i32
    %2 = arith.cmpi ne, %1, %c0_i32_0 : i32
    scf.if %2 {
      %cst_10 = arith.constant 0.000000e+00 : f32
      %12 = vector.broadcast %cst_10 : f32 to vector<32x96xf32>
      %c0_11 = arith.constant 0 : index
      %c0_12 = arith.constant 0 : index
      %13 = vector.load %arg6[%c0_11, %c0_12] : memref<32x96xf32, #tpu.memory_space<vmem>>, vector<32x96xf32>
      tpu.vector_store %arg6[%c0_11, %c0_12], %12 {strides = array<i32>} : memref<32x96xf32, #tpu.memory_space<vmem>>, vector<32x96xf32>,
    } else {
    }
    %c0 = arith.constant 0 : index
    %c0_1 = arith.constant 0 : index
    %3 = vector.load %arg6[%c0, %c0_1] : memref<32x96xf32, #tpu.memory_space<vmem>>, vector<32x96xf32>
    %c0_2 = arith.constant 0 : index
    %c0_3 = arith.constant 0 : index
    %4 = vector.load %arg3[%c0_2, %c0_3] : memref<32x32xbf16, #tpu.memory_space<vmem>>, vector<32x32xbf16>
    %c0_4 = arith.constant 0 : index
    %c0_5 = arith.constant 0 : index
    %5 = vector.load %arg4[%c0_4, %c0_5] : memref<96x32xbf16, #tpu.memory_space<vmem>>, vector<96x32xbf16>
    %cst = arith.constant dense<0.000000e+00> : vector<32x96xf32>
    %6 = tpu.matmul %4, %5, %cst {dimension_numbers = #tpu.dot_dimension_numbers<[1], [1], [0], [0], [0, 0, 1, 0], [], []>} : vector<32x32xbf16>, vector<96x32xbf16>, vector<32x96xf32> -> vector<32x96xf32>
    %7 = arith.addf %3, %6 : vector<32x96xf32>
    %c0_6 = arith.constant 0 : index
    %c0_7 = arith.constant 0 : index
    %8 = vector.load %arg6[%c0_6, %c0_7] : memref<32x96xf32, #tpu.memory_space<vmem>>, vector<32x96xf32>
    tpu.vector_store %arg6[%c0_6, %c0_7], %7 {strides = array<i32>} : memref<32x96xf32, #tpu.memory_space<vmem>>, vector<32x96xf32>,
    %c0_i32_8 = arith.constant 0 : i32
    %9 = arith.cmpi eq, %arg2, %c0_i32_8 : i32
    %10 = arith.extui %9 : i1 to i32
    %c0_i32_9 = arith.constant 0 : i32
    %11 = arith.cmpi ne, %10, %c0_i32_9 : i32
    scf.if %11 {
      %c0_10 = arith.constant 0 : index
      %c0_11 = arith.constant 0 : index
      %12 = vector.load %arg6[%c0_10, %c0_11] : memref<32x96xf32, #tpu.memory_space<vmem>>, vector<32x96xf32>
      %13 = arith.truncf %12 : vector<32x96xf32> to vector<32x96xbf16>
      %c0_12 = arith.constant 0 : index
      %c0_13 = arith.constant 0 : index
      %14 = vector.load %arg5[%c0_12, %c0_13] : memref<32x96xbf16, #tpu.memory_space<vmem>>, vector<32x96xbf16>
      tpu.vector_store %arg5[%c0_12, %c0_13], %13 {strides = array<i32>} : memref<32x96xbf16, #tpu.memory_space<vmem>>, vector<32x96xbf16>,
    } else {
    }
    return
  }
  func.func @transform_0(%arg0: i32, %arg1: i32, %arg2: i32) -> (i32, i32) {
    %c0_i32 = arith.constant 0 : i32
    return %arg0, %arg2 : i32, i32
  }
  func.func @transform_1(%arg0: i32, %arg1: i32, %arg2: i32) -> (i32, i32) {
    %c0_i32 = arith.constant 0 : i32
    return %arg1, %arg2 : i32, i32
  }
  func.func @transform_2(%arg0: i32, %arg1: i32, %arg2: i32) -> (i32, i32) {
    %c0_i32 = arith.constant 0 : i32
    return %arg0, %arg1 : i32, i32
  }
}

module attributes {stable_mosaic.version = 11 : i64} {
  func.func @_flash_attn_kernel(%arg0: i32, %arg1: i32, %arg2: i32, %arg3: i32, %arg4: memref<1x1x16x8xbf16, #tpu.memory_space<vmem>>, %arg5: memref<1x1x16x8xbf16, #tpu.memory_space<vmem>>, %arg6: memref<1x1x16x8xbf16, #tpu.memory_space<vmem>>, %arg7: memref<1x1x16x8xbf16, #tpu.memory_space<vmem>>, %arg8: memref<16x1xf32, #tpu.memory_space<vmem>>, %arg9: memref<16x1xf32, #tpu.memory_space<vmem>>, %arg10: memref<16x8xf32, #tpu.memory_space<vmem>>) attributes {dimension_semantics = [#tpu.dimension_semantics<parallel>, #tpu.dimension_semantics<parallel>, #tpu.dimension_semantics<parallel>, #tpu.dimension_semantics<arbitrary>], iteration_bounds = array<i64: 2, 4, 1, 1>, scalar_prefetch = 0 : i64, scratch_operands = 3 : i64, tpu.core_type = #tpu.core_type<tc>, window_params = [{transform_indices = @transform_0, window_bounds = array<i64: 1, 1, 16, 8>}, {transform_indices = @transform_1, window_bounds = array<i64: 1, 1, 16, 8>}, {transform_indices = @transform_2, window_bounds = array<i64: 1, 1, 16, 8>}, {transform_indices = @transform_3, window_bounds = array<i64: 1, 1, 16, 8>}]} {
    %c0_i32 = arith.constant 0 : i32
    %0 = arith.cmpi eq, %arg3, %c0_i32 : i32
    %1 = arith.extui %0 : i1 to i32
    %c0_i32_0 = arith.constant 0 : i32
    %2 = arith.cmpi ne, %1, %c0_i32_0 : i32
    scf.if %2 {
      %cst_29 = arith.constant 0xFF800000 : f32
      %36 = vector.broadcast %cst_29 : f32 to vector<16x1xf32>
      %c0_30 = arith.constant 0 : index
      %c0_31 = arith.constant 0 : index
      %37 = vector.load %arg8[%c0_30, %c0_31] : memref<16x1xf32, #tpu.memory_space<vmem>>, vector<16x1xf32>
      tpu.vector_store %arg8[%c0_30, %c0_31], %36 {strides = array<i32>} : memref<16x1xf32, #tpu.memory_space<vmem>>, vector<16x1xf32>,
      %cst_32 = arith.constant 0.000000e+00 : f32
      %38 = vector.broadcast %cst_32 : f32 to vector<16x1xf32>
      %c0_33 = arith.constant 0 : index
      %c0_34 = arith.constant 0 : index
      %39 = vector.load %arg9[%c0_33, %c0_34] : memref<16x1xf32, #tpu.memory_space<vmem>>, vector<16x1xf32>
      tpu.vector_store %arg9[%c0_33, %c0_34], %38 {strides = array<i32>} : memref<16x1xf32, #tpu.memory_space<vmem>>, vector<16x1xf32>,
      %cst_35 = arith.constant 0.000000e+00 : f32
      %40 = vector.broadcast %cst_35 : f32 to vector<16x8xf32>
      %c0_36 = arith.constant 0 : index
      %c0_37 = arith.constant 0 : index
      %41 = vector.load %arg10[%c0_36, %c0_37] : memref<16x8xf32, #tpu.memory_space<vmem>>, vector<16x8xf32>
      tpu.vector_store %arg10[%c0_36, %c0_37], %40 {strides = array<i32>} : memref<16x8xf32, #tpu.memory_space<vmem>>, vector<16x8xf32>,
    } else {
    }
    %c0 = arith.constant 0 : index
    %c0_1 = arith.constant 0 : index
    %c0_2 = arith.constant 0 : index
    %c0_3 = arith.constant 0 : index
    %3 = vector.load %arg4[%c0, %c0_1, %c0_2, %c0_3] : memref<1x1x16x8xbf16, #tpu.memory_space<vmem>>, vector<1x1x16x8xbf16>
    %4 = vector.shape_cast %3 : vector<1x1x16x8xbf16> to vector<16x8xbf16>
    %c0_4 = arith.constant 0 : index
    %c0_5 = arith.constant 0 : index
    %c0_6 = arith.constant 0 : index
    %c0_7 = arith.constant 0 : index
    %5 = vector.load %arg5[%c0_4, %c0_5, %c0_6, %c0_7] : memref<1x1x16x8xbf16, #tpu.memory_space<vmem>>, vector<1x1x16x8xbf16>
    %6 = vector.shape_cast %5 : vector<1x1x16x8xbf16> to vector<16x8xbf16>
    %cst = arith.constant dense<0.000000e+00> : vector<16x16xf32>
    %7 = tpu.matmul %4, %6, %cst {dimension_numbers = #tpu.dot_dimension_numbers<[1], [1], [0], [0], [0, 0, 1, 0], [], []>} : vector<16x8xbf16>, vector<16x8xbf16>, vector<16x16xf32> -> vector<16x16xf32>
    %c0_8 = arith.constant 0 : index
    %c0_9 = arith.constant 0 : index
    %8 = vector.load %arg8[%c0_8, %c0_9] : memref<16x1xf32, #tpu.memory_space<vmem>>, vector<16x1xf32>
    %cst_10 = arith.constant dense<0xFF800000> : vector<16xf32>
    %9 = vector.multi_reduction <maximumf>, %7, %cst_10 [1] : vector<16x16xf32> to vector<16xf32>
    %10 = vector.shape_cast %9 : vector<16xf32> to vector<16x1xf32>
    %11 = arith.maximumf %8, %10 : vector<16x1xf32>
    %12 = arith.subf %8, %11 : vector<16x1xf32>
    %13 = math.exp %12 : vector<16x1xf32>
    %14 = vector.broadcast %11 : vector<16x1xf32> to vector<16x16xf32>
    %15 = arith.subf %7, %14 : vector<16x16xf32>
    %16 = math.exp %15 : vector<16x16xf32>
    %c0_11 = arith.constant 0 : index
    %c0_12 = arith.constant 0 : index
    %17 = vector.load %arg9[%c0_11, %c0_12] : memref<16x1xf32, #tpu.memory_space<vmem>>, vector<16x1xf32>
    %18 = arith.mulf %13, %17 : vector<16x1xf32>
    %cst_13 = arith.constant dense<0.000000e+00> : vector<16xf32>
    %19 = vector.multi_reduction <add>, %16, %cst_13 [1] : vector<16x16xf32> to vector<16xf32>
    %20 = vector.shape_cast %19 : vector<16xf32> to vector<16x1xf32>
    %21 = arith.addf %18, %20 : vector<16x1xf32>
    %c0_14 = arith.constant 0 : index
    %c0_15 = arith.constant 0 : index
    %22 = vector.load %arg9[%c0_14, %c0_15] : memref<16x1xf32, #tpu.memory_space<vmem>>, vector<16x1xf32>
    tpu.vector_store %arg9[%c0_14, %c0_15], %21 {strides = array<i32>} : memref<16x1xf32, #tpu.memory_space<vmem>>, vector<16x1xf32>,
    %c0_16 = arith.constant 0 : index
    %c0_17 = arith.constant 0 : index
    %23 = vector.load %arg10[%c0_16, %c0_17] : memref<16x8xf32, #tpu.memory_space<vmem>>, vector<16x8xf32>
    %24 = vector.broadcast %13 : vector<16x1xf32> to vector<16x8xf32>
    %25 = arith.mulf %24, %23 : vector<16x8xf32>
    %26 = arith.truncf %16 : vector<16x16xf32> to vector<16x16xbf16>
    %c0_18 = arith.constant 0 : index
    %c0_19 = arith.constant 0 : index
    %c0_20 = arith.constant 0 : index
    %c0_21 = arith.constant 0 : index
    %27 = vector.load %arg6[%c0_18, %c0_19, %c0_20, %c0_21] : memref<1x1x16x8xbf16, #tpu.memory_space<vmem>>, vector<1x1x16x8xbf16>
    %28 = vector.shape_cast %27 : vector<1x1x16x8xbf16> to vector<16x8xbf16>
    %cst_22 = arith.constant dense<0.000000e+00> : vector<16x8xf32>
    %29 = tpu.matmul %26, %28, %cst_22 {dimension_numbers = #tpu.dot_dimension_numbers<[1], [0], [0], [1], [0, 0, 1, 1], [], []>} : vector<16x16xbf16>, vector<16x8xbf16>, vector<16x8xf32> -> vector<16x8xf32>
    %30 = arith.addf %25, %29 : vector<16x8xf32>
    %c0_23 = arith.constant 0 : index
    %c0_24 = arith.constant 0 : index
    %31 = vector.load %arg10[%c0_23, %c0_24] : memref<16x8xf32, #tpu.memory_space<vmem>>, vector<16x8xf32>
    tpu.vector_store %arg10[%c0_23, %c0_24], %30 {strides = array<i32>} : memref<16x8xf32, #tpu.memory_space<vmem>>, vector<16x8xf32>,
    %c0_25 = arith.constant 0 : index
    %c0_26 = arith.constant 0 : index
    %32 = vector.load %arg8[%c0_25, %c0_26] : memref<16x1xf32, #tpu.memory_space<vmem>>, vector<16x1xf32>
    tpu.vector_store %arg8[%c0_25, %c0_26], %11 {strides = array<i32>} : memref<16x1xf32, #tpu.memory_space<vmem>>, vector<16x1xf32>,
    %c0_i32_27 = arith.constant 0 : i32
    %33 = arith.cmpi eq, %arg3, %c0_i32_27 : i32
    %34 = arith.extui %33 : i1 to i32
    %c0_i32_28 = arith.constant 0 : i32
    %35 = arith.cmpi ne, %34, %c0_i32_28 : i32
    scf.if %35 {
      %c0_29 = arith.constant 0 : index
      %c0_30 = arith.constant 0 : index
      %36 = vector.load %arg10[%c0_29, %c0_30] : memref<16x8xf32, #tpu.memory_space<vmem>>, vector<16x8xf32>
      %c0_31 = arith.constant 0 : index
      %c0_32 = arith.constant 0 : index
      %37 = vector.load %arg9[%c0_31, %c0_32] : memref<16x1xf32, #tpu.memory_space<vmem>>, vector<16x1xf32>
      %38 = tpu.reciprocal %37 {approx = true} : vector<16x1xf32> -> vector<16x1xf32>
      %39 = vector.broadcast %38 : vector<16x1xf32> to vector<16x8xf32>
      %40 = arith.mulf %36, %39 : vector<16x8xf32>
      %41 = arith.truncf %40 : vector<16x8xf32> to vector<16x8xbf16>
      %c0_33 = arith.constant 0 : index
      %c0_34 = arith.constant 0 : index
      %c0_35 = arith.constant 0 : index
      %c0_36 = arith.constant 0 : index
      %42 = vector.load %arg7[%c0_33, %c0_34, %c0_35, %c0_36] : memref<1x1x16x8xbf16, #tpu.memory_space<vmem>>, vector<1x1x16x8xbf16>
      %43 = vector.shape_cast %42 : vector<1x1x16x8xbf16> to vector<16x8xbf16>
      %44 = vector.shape_cast %41 : vector<16x8xbf16> to vector<1x1x16x8xbf16>
      tpu.vector_store %arg7[%c0_33, %c0_34, %c0_35, %c0_36], %44 {strides = array<i32>} : memref<1x1x16x8xbf16, #tpu.memory_space<vmem>>, vector<1x1x16x8xbf16>,
    } else {
    }
    return
  }
  func.func @transform_0(%arg0: i32, %arg1: i32, %arg2: i32, %arg3: i32) -> (i32, i32, i32, i32) {
    %c0_i32 = arith.constant 0 : i32
    %c0_i32_0 = arith.constant 0 : i32
    return %arg0, %arg1, %arg2, %c0_i32 : i32, i32, i32, i32
  }
  func.func @transform_1(%arg0: i32, %arg1: i32, %arg2: i32, %arg3: i32) -> (i32, i32, i32, i32) {
    %c0_i32 = arith.constant 0 : i32
    %c0_i32_0 = arith.constant 0 : i32
    return %arg0, %arg1, %arg3, %c0_i32 : i32, i32, i32, i32
  }
  func.func @transform_2(%arg0: i32, %arg1: i32, %arg2: i32, %arg3: i32) -> (i32, i32, i32, i32) {
    %c0_i32 = arith.constant 0 : i32
    %c0_i32_0 = arith.constant 0 : i32
    return %arg0, %arg1, %arg3, %c0_i32 : i32, i32, i32, i32
  }
  func.func @transform_3(%arg0: i32, %arg1: i32, %arg2: i32, %arg3: i32) -> (i32, i32, i32, i32) {
    %c0_i32 = arith.constant 0 : i32
    %c0_i32_0 = arith.constant 0 : i32
    return %arg0, %arg1, %arg2, %c0_i32 : i32, i32, i32, i32
  }
}

</mosaic_0001>

<bundles_post_ra>
// kernel: nearest_neighbor_attention_forward.3
= control target key start
LH: loop header
LB: loop body
LE: loop exit
PB: predicated region body
PF: predicated region fallthrough
CT: control target
= control target key end

     0   :  { %s911_s12 = smov 0   ;;  %s913_s13 = smov 0   ;;  %s993_s0 = inlined_call_operand.vmem [shape: bf16[2,4,16,8], index: 0, kind: input, shape index: {}]   ;;  %s994_s1 = inlined_call_operand.vmem [shape: bf16[2,4,16,8], index: 1, kind: input, shape index: {}]   ;;  %s995_s2 = inlined_call_operand.vmem [shape: bf16[2,4,16,8], index: 2, kind: input, shape index: {}]   ;;  %s996_s3 = inlined_call_operand.vmem [shape: bf16[2,4,16,8], index: 3, kind: output, shape index: {}]  }
   0x1   :  { %s915_s14 = smov 0   ;;  %s917_s15 = smov 0  }
   0x2   :  { %s919_s16 = smov 0  }
   0x3 LB: > { %s35_s17 = sadd.s32 1, %s877_s14  ;;  %s39_s18 = sadd.s32 1, %s881_s15  ;;  %s885_s16 = sphi %s919_s16, %s13_s16   ;;  %s881_s15 = sphi %s917_s15, %s1000_s15   ;;  %s877_s14 = sphi %s915_s14, %s999_s14   ;;  %s873_s13 = sphi %s913_s13, %s998_s13   ;;  %s869_s12 = sphi %s911_s12, %s997_s12  }
   0x4   : > { %p37_p0 = scmp.ge.s32.totalorder %s35_s17, 4  ;;  %p746_p1 = scmp.ge.s32.totalorder %s885_s16, 1 }
   0x5   : > { %p226_p2 = scmp.lt.s32.totalorder %s885_s16, 9 }
   0x6   : > { %s1002_s17 = smov (%p37_p0, %s35_s17), 0  ;;  %s1004_s18 = smov (!%p37_p0, %s39_s18), %s881_s15 }
   0x7   : > { %p227_p3 = pnand %p746_p1, %p226_p2  ;;  %p41_p4 = scmp.ge.s32.totalorder %s1004_s18, 2 }
   0x8   : > { %p293_p5 = scmp.lt.s32.totalorder (!%p227_p3), %s873_s13, 1  ;;  %p295_p6 = scmp.lt.s32.totalorder (!%p227_p3), %s869_s12, 3  ;;  %vm358_vm0 = vcmask (!%p227_p3), 64512   ;;  %v887_v0 = vmov (!%p227_p3), 0.0   ;;  %vm888_vm1 = vmmov (!%p227_p3), 0   ;;  %vm353_vm2 = vcmask (!%p227_p3), 7168  }
   0x9   : > { %s1006_s18 = smov (%p41_p4, %s1004_s18), 0  ;;  %230 = sbr.rel (%p227_p3) target bundleno = 831 (0x33f), region = 32 }
   0xa   : > { %774 = vmatprep.subr.bf16.mxu0 (!%p227_p3), %v887_v0  ;;  %359 = vst.msk [vmem:[#allocation4] sm:$0xff] (!%p227_p3), %vm358_vm0, %v887_v0  ;;  %360 = vst.msk [vmem:[#allocation4 + $0x8] sm:$0xff] (!%p227_p3), %vm358_vm0, %v887_v0  ;;  %776 = vmatprep.mubr.msk.bf16.mxu0 (!%p227_p3), %vm888_vm1, %v887_v0  ;;  %v889_v4 = vmov (!%p227_p3), -inf   ;;  %vm425_vm3 = vcmask (!%p227_p3), 130048   ;;  %v890_v11 = vmov (!%p227_p3), 0   ;;  %vm573_vm4 = vcmask (!%p227_p3), 60416  }
   0xb   : > { %780 = vmatprep.subr.bf16.mxu1 (!%p227_p3), %v887_v0  ;;  %782 = vmatprep.mubr.msk.bf16.mxu1 (!%p227_p3), %vm888_vm1, %v887_v0  ;;  %354 = vst.msk [vmem:[#allocation2] sm:$0xff] (!%p227_p3), %vm353_vm2, %v889_v4  ;;  %355 = vst.msk [vmem:[#allocation2 + $0x8] sm:$0xff] (!%p227_p3), %vm353_vm2, %v889_v4 }
   0xc   : > { %356 = vst.msk [vmem:[#allocation3] sm:$0xff] (!%p227_p3), %vm353_vm2, %v887_v0  ;;  %357 = vst.msk [vmem:[#allocation3 + $0x8] sm:$0xff] (!%p227_p3), %vm353_vm2, %v887_v0  ;;  %830 = vset.pattern.permute.xlu1 (!%p227_p3), %v890_v11  ;;  %831 = vset.pattern.permute.xlu0 (!%p227_p3), %v890_v11 }
  0x10   : > { %s1008_s13 = smov (!%p293_p5, %s873_s13), 1  ;;  %s1010_s12 = smov (!%p295_p6, %s869_s12), 3 }
  0x11   : > { %s748_s19 = sshll.u32 %s1008_s13, 3  ;;  %s747_s20 = sshll.u32 %s1010_s12, 1  ;;  %v471_v48 = vld [vmem:[#allocation4] sm:$0xff]  ;;  %v472_v50 = vld [vmem:[#allocation4 + $0x8] sm:$0xff] }
  0x12   : > { %s302_s21 = sadd.s32 %s748_s19, %s747_s20  ;;  %v423_v12 = vld [vmem:[#allocation2] sm:$0xff]  ;;  %v424_v15 = vld [vmem:[#allocation2 + $0x8] sm:$0xff] }
  0x13   : > { %s943_s22 = sshll.u32 %s302_s21, 2  ;;  %v456_v36 = vld [vmem:[#allocation3] sm:$0xff]  ;;  %v457_v39 = vld [vmem:[#allocation3 + $0x8] sm:$0xff] }
  0x14   : > { %s318_s25 = scalar_lea.vmem %s994_s1, %s943_s22  ;;  %s304_s28 = scalar_lea.vmem %s993_s0, %s943_s22 }
  0x15   : > { %v832_v1 = vld [vmem:[%s318_s25] sm:$0xff]   ;;  %s332_s4 = scalar_lea.vmem %s995_s2, %s943_s22  ;;  %s346_s7 = scalar_lea.vmem %s996_s3, %s943_s22 }
  0x16   : > { %v380_v2 = vsel %vm358_vm0, %v832_v1, 0  ;;  %v833_v3 = vld [vmem:[%s304_s28] sm:$0xff]  }
  0x17   : > { %775 = vmatpush3.bf16.xpose.msra.mxu0 %v380_v2  ;;  %v834_v20 = vld [vmem:[%s332_s4] sm:$0xff]  }
  0x18   : > { %781 = vmatpush3.bf16.msra.mxu1 %v834_v20 }
  0x1e   : > { %777 = vmatmul.mubr.msk.bf16.vlgmr.msra.gmra.mrb[0].mxu0 %vm358_vm0, %v833_v3 }
  0xf1   : > { %v416_v5 = vpop.f32.mrb[0].mxu0 }
  0xf2   : > { %v778_v6 = vpop.f32.mrb[1].mxu0  ;;  %v426_v7 = vsel %vm425_vm3, %v416_v5, -inf }
  0xf3   : > { %427 = vmax.xlane.f32.xlu0 %v426_v7  ;;  %v419_v8 = vpop.f32.mrb[2].mxu0 }
  0xf4   : > { %v779_v9 = vpop.f32.mrb[3].mxu0  ;;  %v429_v10 = vsel %vm425_vm3, %v419_v8, -inf }
  0xf7   : > { %430 = vmax.xlane.f32.xlu0 %v429_v10 }
 0x180   : > { %v428_v13 = vpop.xlane.xlu0 %427 }
 0x181   : > { %v432_v14 = vmax.f32 %v423_v12, %v428_v13 }
 0x183   : > { %v434_v16 = vsub.f32 %v423_v12, %v432_v14  ;;  %542 = vst.msk [vmem:[#allocation2] sm:$0xff] %vm353_vm2, %v432_v14  ;;  %442 = vperm.xlu1 %830, %v432_v14  }
 0x184   : > { %v431_v17 = vpop.xlane.xlu0 %430 }
 0x185   : > { %v433_v18 = vmax.f32 %v424_v15, %v431_v17  ;;  %v436_v33 = vmul.f32 1.442695, %v434_v16 }
 0x187   : > { %v435_v19 = vsub.f32 %v424_v15, %v433_v18  ;;  %543 = vst.msk [vmem:[#allocation2 + $0x8] sm:$0xff] %vm353_vm2, %v433_v18  ;;  %447 = vperm.xlu1 %830, %v433_v18  }
 0x189   : > { %v438_v32 = vmul.f32 1.442695, %v435_v19 }
 0x202   : > { %v443_v21 = vpop.permute.xlu1 %442 }
 0x203   : > { %v450_v22 = vsub.f32 %v416_v5, %v443_v21 }
 0x205   : > { %v452_v23 = vmul.f32 1.442695, %v450_v22 }
 0x206   : > { %v448_v24 = vpop.permute.xlu1 %447 }
 0x207   : > { %835 = vpow2.f32 %v452_v23  ;;  %v451_v25 = vsub.f32 %v419_v8, %v448_v24 }
 0x209   : > { %v454_v26 = vmul.f32 1.442695, %v451_v25 }
 0x20b   : > { %837 = vpow2.f32 %v454_v26 }
 0x20c   : > { %839 = vpow2.f32 %v438_v32 }
 0x20d   : > { %841 = vpow2.f32 %v436_v33 }
 0x211   : > { %v836_v27 = vpop.eup %835 }
 0x212   : > { %v460_v28 = vsel %vm425_vm3, %v836_v27, 0.0 }
 0x213   : > { %461 = vadd.xlane.f32.xlu0 %v460_v28 }
 0x215   : > { %v838_v29 = vpop.eup %837 }
 0x216   : > { %v463_v30 = vsel %vm425_vm3, %v838_v29, 0.0  ;;  %v485_v31 = vpack.c.bf16 %v838_v29, %v836_v27  ;;  %v840_v34 = vpop.eup %839 }
 0x217   : > { %464 = vadd.xlane.f32.xlu1 %v463_v30  ;;  %v842_v35 = vpop.eup %841  ;;  %v459_v41 = vmul.f32 %v840_v34, %v457_v39 }
 0x218   : > { %783 = vmatmul.mubr.msk.bf16.vlgmr.msra.gmra.mrb[0].mxu1 %vm425_vm3, %v485_v31  ;;  %v458_v37 = vmul.f32 %v842_v35, %v456_v36 }
 0x228   : > { %480 = vperm.xlu1 %830, %v840_v34  }
 0x229   : > { %475 = vperm.xlu0 %831, %v842_v35  }
 0x2a0   : > { %v462_v38 = vpop.xlane.xlu0 %461 }
 0x2a1   : > { %v466_v40 = vadd.f32 %v462_v38, %v458_v37 }
 0x2a3   : > { %469 = vst.msk [vmem:[#allocation3] sm:$0xff] %vm353_vm2, %v466_v40 }
 0x2a4   : > { %v465_v42 = vpop.xlane.xlu1 %464 }
 0x2a5   : > { %v467_v43 = vadd.f32 %v465_v42, %v459_v41 }
 0x2a7   : > { %470 = vst.msk [vmem:[#allocation3 + $0x8] sm:$0xff] %vm353_vm2, %v467_v43 }
 0x2a8   : > { %v476_v49 = vpop.permute.xlu0 %475  ;;  %v481_v51 = vpop.permute.xlu1 %480 }
 0x2a9   : > { %v483_v52 = vmul.f32 %v476_v49, %v471_v48  ;;  %v484_v54 = vmul.f32 %v481_v51, %v472_v50 }
 0x2aa   : > { %v549_v44 = vld [vmem:[#allocation3] sm:$0xff] }
 0x2ab   : > { %843 = vrcp.f32 %v549_v44 }
 0x2ae   : > { %v550_v45 = vld [vmem:[#allocation3 + $0x8] sm:$0xff] }
 0x2af   : > { %845 = vrcp.f32 %v550_v45 }
 0x2b5   : > { %v844_v46 = vpop.eup %843 }
 0x2b6   : > { %555 = vperm.xlu0 %831, %v844_v46  }
 0x2b9   : > { %v846_v47 = vpop.eup %845 }
 0x2ba   : > { %560 = vperm.xlu0 %831, %v846_v47  }
 0x2eb   : > { %v531_v53 = vpop.f32.mrb[0].mxu1 }
 0x2ec   : > { %v538_v55 = vadd.f32 %v531_v53, %v483_v52  ;;  %v784_v56 = vpop.f32.mrb[1].mxu1 }
 0x2ed   : > { %v534_v57 = vpop.f32.mrb[2].mxu1 }
 0x2ee   : > { %540 = vst.msk [vmem:[#allocation4] sm:$0xff] %vm358_vm0, %v538_v55  ;;  %v539_v58 = vadd.f32 %v534_v57, %v484_v54  ;;  %v785_v59 = vpop.f32.mrb[3].mxu1 }
 0x2f0   : > { %541 = vst.msk [vmem:[#allocation4 + $0x8] sm:$0xff] %vm358_vm0, %v539_v58 }
 0x2f5   : > { %v547_v60 = vld [vmem:[#allocation4] sm:$0xff] }
 0x2f7   : > { %v548_v0 = vld [vmem:[#allocation4 + $0x8] sm:$0xff] }
 0x335   : > { %v556_v61 = vpop.permute.xlu0 %555 }
 0x336   : > { %v563_v62 = vmul.f32 %v556_v61, %v547_v60 }
 0x338   : > { %v768_v63 = vpack.c.bf16 %v563_v62, %v563_v62 }
 0x339   : > { %v561_v1 = vpop.permute.xlu0 %560 }
 0x33a   : > { %574 = vst.msk [vmem:[%s346_s7] sm:$0xf] %vm573_vm4, %v768_v63  ;;  %v564_v2 = vmul.f32 %v561_v1, %v548_v0 }
 0x33c   : > { %v769_v3 = vpack.c.bf16 %v564_v2, %v564_v2 }
 0x33e   : > { %575 = vst.msk [vmem:[%s346_s7 + $0x4] sm:$0xf] %vm573_vm4, %v769_v3 }
 0x33f PF: > { %s13_s16 = sadd.s32 1, %s885_s16   ;;  %s997_s12 = smov %s877_s14 }
 0x340   : > { %p10_p7 = scmp.ge.s32.totalorder %s13_s16, 10   ;;  %s998_s13 = smov %s881_s15 }
 0x341   : > { %s999_s14 = smov %s1002_s17  ;;  %s1000_s15 = smov %s1006_s18 }
 0x342   :  { %12 = sbr.rel (!%p10_p7) target bundleno = 3 (0x3), region = 76 }

// kernel: nearest_neighbor_attention_forward.2
= control target key start
LH: loop header
LB: loop body
LE: loop exit
PB: predicated region body
PF: predicated region fallthrough
CT: control target
= control target key end

     0   :  { %vm81_vm0 = vcmask 261120   ;;  %vm16_vm1 = vcmask 785408   ;;  %v253_v1 = vmov 0.0   ;;  %vm187_vm2 = vcmask 781312   ;;  %s327_s1 = inlined_call_operand.vmem [shape: bf16[96,32], index: 1, kind: input, shape index: {}]   ;;  %s328_s0 = inlined_call_operand.vmem [shape: bf16[32,32], index: 0, kind: input, shape index: {}]   ;;  %s329_s2 = inlined_call_operand.vmem [shape: bf16[32,96], index: 2, kind: output, shape index: {}]  }
   0x1   :  { %v245_v0 = vld [vmem:[%s327_s1] sm:$0xff]   ;;  %19 = vst.msk [vmem:[#allocation2 + $0x10] sm:$0xff] %vm16_vm1, %v253_v1  ;;  %17 = vst.msk [vmem:[#allocation2] sm:$0xff] %vm16_vm1, %v253_v1  ;;  %v246_v2 = vld [vmem:[%s327_s1 + $0x8] sm:$0xff]  }
   0x2   :  { %18 = vst.msk [vmem:[#allocation2 + $0x8] sm:$0xff] %vm16_vm1, %v253_v1  ;;  %20 = vst.msk [vmem:[#allocation2 + $0x18] sm:$0xff] %vm16_vm1, %v253_v1  ;;  %238 = vmatprep.subr.msk.bf16.mxu0 %vm81_vm0, %v245_v0  ;;  %v89_v3 = vsel %vm81_vm0, %v245_v0, 0  ;;  %v251_v4 = vld [vmem:[%s328_s0] sm:$0xff]   ;;  %v92_v5 = vsel %vm81_vm0, %v246_v2, 0  ;;  %v247_v6 = vld [vmem:[%s327_s1 + $0x10] sm:$0xff]  }
   0x3   :  { %223 = vmatpush3.bf16.xpose.msra.mxu0 %v89_v3  ;;  %234 = vmatprep.mubr.msk.bf16.mxu0 %vm81_vm0, %v251_v4  ;;  %v95_v7 = vsel %vm81_vm0, %v247_v6, 0  ;;  %v248_v8 = vld [vmem:[%s327_s1 + $0x18] sm:$0xff]   ;;  %v249_v10 = vld [vmem:[%s327_s1 + $0x20] sm:$0xff]   ;;  %v250_v12 = vld [vmem:[%s327_s1 + $0x28] sm:$0xff]  }
   0x4   :  { %239 = vmatprep.subr.msk.bf16.mxu0 %vm81_vm0, %v246_v2  ;;  %v98_v9 = vsel %vm81_vm0, %v248_v8, 0  ;;  %v101_v11 = vsel %vm81_vm0, %v249_v10, 0  ;;  %v104_v13 = vsel %vm81_vm0, %v250_v12, 0  ;;  %v252_v14 = vld [vmem:[%s328_s0 + $0x8] sm:$0xff]  }
   0x8   :  { %v23_v15 = vld [vmem:[#allocation2 + $0x10] sm:$0xff]  ;;  %v21_v16 = vld [vmem:[#allocation2] sm:$0xff] }
   0x9   :  { %v24_v18 = vld [vmem:[#allocation2 + $0x18] sm:$0xff]  ;;  %v22_v21 = vld [vmem:[#allocation2 + $0x8] sm:$0xff] }
   0xb   :  { %225 = vmatpush3.bf16.xpose.msra.mxu0 %v92_v5 }
   0xc   :  { %240 = vmatprep.subr.msk.bf16.mxu0 %vm81_vm0, %v247_v6 }
  0x13   :  { %227 = vmatpush3.bf16.xpose.msra.mxu0 %v95_v7 }
  0x14   :  { %241 = vmatprep.subr.msk.bf16.mxu0 %vm81_vm0, %v248_v8 }
  0x1b   :  { %229 = vmatpush3.bf16.xpose.msra.mxu0 %v98_v9 }
  0x1c   :  { %242 = vmatprep.subr.msk.bf16.mxu0 %vm81_vm0, %v249_v10 }
  0x23   :  { %231 = vmatpush3.bf16.xpose.msra.mxu0 %v101_v11 }
  0x24   :  { %243 = vmatprep.subr.msk.bf16.mxu0 %vm81_vm0, %v250_v12 }
  0x2b   :  { %233 = vmatpush3.bf16.xpose.msra.mxu0 %v104_v13 }
  0x32   :  { %235 = vmatmul.mubr.msk.bf16.vlgmr.msra.gmra.mrb[0].mxu0 %vm81_vm0, %v252_v14 }
 0x105   :  { %v236_v17 = vpop.f32.mrb[0].mxu0 }
 0x106   :  { %v157_v19 = vadd.f32 %v236_v17, %v23_v15  ;;  %v140_v20 = vpop.f32.mrb[1].mxu0 }
 0x107   :  { %v155_v22 = vadd.f32 %v140_v20, %v21_v16  ;;  %v237_v23 = vpop.f32.mrb[2].mxu0 }
 0x108   :  { %162 = vst.msk [vmem:[#allocation2 + $0x10] sm:$0xff] %vm16_vm1, %v157_v19  ;;  %v158_v24 = vadd.f32 %v237_v23, %v24_v18  ;;  %v143_v25 = vpop.f32.mrb[3].mxu0 }
 0x109   :  { %160 = vst.msk [vmem:[#allocation2] sm:$0xff] %vm16_vm1, %v155_v22  ;;  %v156_v26 = vadd.f32 %v143_v25, %v22_v21 }
 0x10a   :  { %163 = vst.msk [vmem:[#allocation2 + $0x18] sm:$0xff] %vm16_vm1, %v158_v24 }
 0x10b   :  { %161 = vst.msk [vmem:[#allocation2 + $0x8] sm:$0xff] %vm16_vm1, %v156_v26 }
 0x10f   :  { %v169_v27 = vld [vmem:[#allocation2 + $0x10] sm:$0xff] }
 0x110   :  { %v212_v28 = vpack.c.bf16 %v169_v27, %v169_v27  ;;  %v167_v29 = vld [vmem:[#allocation2] sm:$0xff] }
 0x111   :  { %v210_v30 = vpack.c.bf16 %v167_v29, %v167_v29  ;;  %v170_v31 = vld [vmem:[#allocation2 + $0x18] sm:$0xff] }
 0x112   :  { %190 = vst.msk [vmem:[%s329_s2 + $0x8] sm:$0xf] %vm187_vm2, %v212_v28  ;;  %v213_v32 = vpack.c.bf16 %v170_v31, %v170_v31  ;;  %v168_v33 = vld [vmem:[#allocation2 + $0x8] sm:$0xff] }
 0x113   :  { %188 = vst.msk [vmem:[%s329_s2] sm:$0xf] %vm187_vm2, %v210_v30  ;;  %v211_v34 = vpack.c.bf16 %v168_v33, %v168_v33 }
 0x114   :  { %191 = vst.msk [vmem:[%s329_s2 + $0xc] sm:$0xf] %vm187_vm2, %v213_v32 }
 0x115   :  { %189 = vst.msk [vmem:[%s329_s2 + $0x4] sm:$0xf] %vm187_vm2, %v211_v34 }

</bundles_post_ra>
